<compile_context>
chip_gen: v7x
topology: tpu7x:2x2x1
jax: 0.10.0
libtpu: 0.0.40
codegen_flags: <defaults>
</compile_context>

<pallas_src>
import math

import numpy as np
import jax
import jax.numpy as jnp
from jax.experimental import pallas as pl
from jax.experimental.pallas import tpu as pltpu


def _round_up(x, m):
    return ((x + m - 1) // m) * m


def _pick_tile(size, cap):
    """Largest divisor of `size` that is a multiple of 128 and <= cap.

    `size` must be a multiple of 128; never silently falls back to a huge
    whole-axis block unless the whole axis already fits under `cap`.
    """
    t = min(cap, size)
    t = max((t // 128) * 128, 128)
    while size % t != 0:
        t -= 128
    return t


# -----------------------------------------------------------------------------
# Pallas kernel: band-windowed tiled matmul, f32 accumulation directly in the
# output block, fused bias add on the last k step.
#   kstart_ref : (Nj,)    int32 SMEM  per-output-block first k-block of band
#   x_ref      : (tm, tk) bf16  activations (spa-major column order)
#   w_ref      : (tk, tn) bf16  masked weight, (K, N) spa-major layout
#   b_ref      : (1,  tn) f32   bias (spa-major order)
#   o_ref      : (tm, tn) f32   output block (resident across the k axis)
# -----------------------------------------------------------------------------
def _lcn_matmul_kernel(kstart_ref, x_ref, w_ref, b_ref, o_ref):
    del kstart_ref  # only used by the index_maps
    kk = pl.program_id(2)

    @pl.when(kk == 0)
    def _():
        o_ref[...] = jnp.zeros_like(o_ref)

    o_ref[...] += jnp.dot(x_ref[...], w_ref[...],
                          preferred_element_type=jnp.float32)

    @pl.when(kk == pl.num_programs(2) - 1)
    def _():
        o_ref[...] += b_ref[...]


def _lcn_matmul(k_start, x_pad, w_bf, b_pad, *, tm, tn, tk, kw_blocks):
    m_pad, _ = x_pad.shape
    _, n_pad = w_bf.shape
    grid = (m_pad // tm, n_pad // tn, kw_blocks)
    return pl.pallas_call(
        _lcn_matmul_kernel,
        out_shape=jax.ShapeDtypeStruct((m_pad, n_pad), jnp.float32),
        grid_spec=pltpu.PrefetchScalarGridSpec(
            num_scalar_prefetch=1,
            grid=grid,
            in_specs=[
                pl.BlockSpec((tm, tk), lambda i, j, kk, ks: (i, ks[j] + kk)),
                pl.BlockSpec((tk, tn), lambda i, j, kk, ks: (ks[j] + kk, j)),
                pl.BlockSpec((1, tn), lambda i, j, kk, ks: (0, j)),
            ],
            out_specs=pl.BlockSpec((tm, tn), lambda i, j, kk, ks: (i, j)),
        ),
        compiler_params=pltpu.CompilerParams(
            dimension_semantics=("parallel", "parallel", "arbitrary"),
            vmem_limit_bytes=48 * 1024 * 1024,   # safe on v7x's 64 MiB VMEM
        ),
    )(k_start, x_pad, w_bf, b_pad)


# -----------------------------------------------------------------------------
# Module-equivalent parameter construction + cached densification + forward.
# -----------------------------------------------------------------------------
class LCNLinearPallas:
    """JAX/Pallas equivalent of the PyTorch LCNLinear module."""

    def __init__(self, spa_in, spa_out, chn_in, chn_out, mask, key, *,
                 tm_cap=512, tn_cap=1024, tk_cap=1024, force_pallas=False):
        self.spa_in, self.spa_out = spa_in, spa_out
        self.chn_in, self.chn_out = chn_in, chn_out
        self.force_pallas = force_pallas
        self.tm_cap = _round_up(min(tm_cap, 1024), 16)

        K = chn_in * spa_in
        N = chn_out * spa_out
        K_pad = _round_up(K, 128)
        N_pad = _round_up(N, 128)
        self.K, self.N, self.K_pad, self.N_pad = K, N, K_pad, N_pad
        # int32 scatter / flat indices must not overflow.
        assert K_pad * N_pad < 2 ** 31, "dense masked weight too large for int32 indexing"

        mask = np.asarray(mask, dtype=np.float32)            # (spa_out, spa_in)

        # ---- nonzeros in the module's chn-major (N, K) order (== torch) ----
        mask_full = np.tile(mask, (chn_out, chn_in))         # == torch .repeat
        rows, cols = np.nonzero(mask_full > 0)               # row-major order
        nnz = rows.shape[0]

        # ---- permute to spatial-major order: the LCN mask becomes a block
        #      band, and the weight scatters straight into the transposed
        #      (K_pad, N_pad) layout (no runtime transpose). ----
        c_out, s_out = rows // spa_out, rows % spa_out
        c_in, s_in = cols // spa_in, cols % spa_in
        n_spa = s_out * chn_out + c_out                      # output index (N)
        k_spa = s_in * chn_in + c_in                         # input index  (K)
        self._nz_kn_idx = jnp.asarray(
            (k_spa.astype(np.int64) * N_pad + n_spa).astype(np.int32))

        # ---- tile selection (independent of batch) ----
        tk = _pick_tile(K_pad, tk_cap)
        tn = _pick_tile(N_pad, tn_cap)
        if N_pad // tn < 2 and N_pad >= 256:
            # guarantee >=2 programs on the parallel j axis (v7x has 2 TCs)
            tn = _pick_tile(N_pad, N_pad // 2)
        self.tn, self.tk = tn, tk

        # ---- band window: for each output block j, the first k-block of a
        #      uniform-width window covering all of its nonzero k columns ----
        ms = (np.kron(mask.astype(np.int8),
                      np.ones((chn_out, chn_in), dtype=np.int8)) > 0)
        mask_spa = np.zeros((N_pad, K_pad), dtype=bool)
        mask_spa[:N, :K] = ms
        k_blocks = K_pad // tk
        n_jb = N_pad // tn
        kb_min = np.zeros(n_jb, dtype=np.int64)
        kb_max = np.zeros(n_jb, dtype=np.int64)
        for j in range(n_jb):
            nz = np.nonzero(mask_spa[j * tn:(j + 1) * tn].any(axis=0))[0]
            if nz.size:
                kb_min[j] = nz[0] // tk
                kb_max[j] = nz[-1] // tk
        self.kw_blocks = int((kb_max - kb_min + 1).max())
        self._k_start = jnp.asarray(
            np.minimum(kb_min, k_blocks - self.kw_blocks), dtype=jnp.int32)

        # ---- parameters: matches reset_parameters() of the torch module ----
        # kaiming_uniform_(a=sqrt(3)) on weight viewed as (-1, chn_out, chn_in)
        # -> fan_in = chn_out*chn_in, gain = sqrt(0.5), bound = gain*sqrt(3/fan_in)
        fan_in = chn_out * chn_in
        w_bound = math.sqrt(0.5) * math.sqrt(3.0 / fan_in)
        b_bound = 1.0 / math.sqrt(fan_in)
        kw, kb = jax.random.split(key)
        self.weight = jax.random.uniform(kw, (nnz,), jnp.float32,
                                         minval=-w_bound, maxval=w_bound)
        self.bias = jax.random.uniform(kb, (N,), jnp.float32,
                                       minval=-b_bound, maxval=b_bound)

        # ---- densify + permute + cast ONCE (per weight update) and cache ----
        self._w_bf = self._densify(self.weight)              # (K_pad, N_pad) bf16
        self._b_pad = self._pad_bias(self.bias)              # (1, N_pad)    f32

        # Whole forward (permute + pad + pallas matmul + un-permute) jitted.
        self._fwd = jax.jit(self._forward_impl)

    # (K_pad, N_pad) spa-major dense masked weight, cached directly in bf16.
    def _densify(self, weight):
        flat = jnp.zeros((self.K_pad * self.N_pad,), jnp.float32)
        flat = flat.at[self._nz_kn_idx].set(weight.astype(jnp.float32))
        return flat.reshape(self.K_pad, self.N_pad).astype(jnp.bfloat16)

    def _pad_bias(self, bias):
        # chn-major (N,) -> spa-major order, padded to (1, N_pad) f32, once.
        b_spa = bias.reshape(self.chn_out, self.spa_out).T.reshape(-1)
        return jnp.zeros((1, self.N_pad), jnp.float32).at[0, :self.N].set(b_spa)

    def update_params(self, weight, bias=None):
        self.weight = weight
        self._w_bf = self._densify(weight)
        if bias is not None:
            self.bias = bias
            self._b_pad = self._pad_bias(bias)

    def _forward_impl(self, x, w_bf, b_pad, k_start):
        B = x.shape[0]
        x_flat = x.reshape(B, -1)                            # chn-major, like torch
        # chn-major -> spa-major column order (k' = s_in*chn_in + c_in)
        x_spa = jnp.transpose(
            x_flat.reshape(B, self.chn_in, self.spa_in), (0, 2, 1)
        ).reshape(B, self.K)

        # batch padded to a multiple of 16 (bf16 sublane packing); K padded.
        m_pad = max(16, _round_up(B, 16))
        tm = m_pad if m_pad <= self.tm_cap else self.tm_cap
        m_pad = _round_up(m_pad, tm)
        x_pad = jnp.zeros((m_pad, self.K_pad), jnp.bfloat16)
        x_pad = x_pad.at[:B, :self.K].set(x_spa.astype(jnp.bfloat16))

        grid = (m_pad // tm, self.N_pad // self.tn, self.kw_blocks)
        if self.force_pallas or max(grid) > 1:
            y = _lcn_matmul(k_start, x_pad, w_bf, b_pad,
                            tm=tm, tn=self.tn, tk=self.tk,
                            kw_blocks=self.kw_blocks)
        else:
            # Single-grid-step shapes: a one-step pallas_call is pure launch +
            # DMA-setup overhead; let XLA fuse the tiny dot + bias instead.
            y = jnp.dot(x_pad, w_bf,
                        preferred_element_type=jnp.float32) + b_pad

        # un-pad and permute back to the module's chn-major output order
        y = y[:B, :self.N].reshape(B, self.spa_out, self.chn_out)
        return jnp.transpose(y, (0, 2, 1)).reshape(B, self.N)

    def __call__(self, x):
        return self._fwd(x, self._w_bf, self._b_pad, self._k_start)


# -----------------------------------------------------------------------------
if __name__ == "__main__":
    key = jax.random.PRNGKey(0)
    k_param, k_x = jax.random.split(key)

    # Small shapes consistent with the module: K = 64, N = 128.
    spa_in, spa_out = 16, 16
    chn_in, chn_out = 4, 8
    batch = 8

    # Deterministic banded locally-connected spatial mask, (spa_out, spa_in).
    mask = np.zeros((spa_out, spa_in), dtype=np.float32)
    for o in range(spa_out):
        for i in range(spa_in):
            if abs(o - i) <= 2:
                mask[o, i] = 1.0

    # force_pallas=True so the demo exercises the Pallas kernel even though
    # this shape's grid collapses to a single step.
    mod = LCNLinearPallas(spa_in, spa_out, chn_in, chn_out, mask, k_param,
                          force_pallas=True)

    # Input: (batch, chn_in, spa_in) — flattened inside forward, like torch.
    x = jax.random.normal(k_x, (batch, chn_in, spa_in), dtype=jnp.float32)

    y = jax.block_until_ready(mod(x))
    assert y.shape == (batch, spa_out * chn_out)

    # ---- reference: original module semantics (chn-major dense weight) -----
    x_flat = np.asarray(x, dtype=np.float32).reshape(batch, -1)
    mask_full = np.tile(mask, (chn_out, chn_in))
    a = np.zeros_like(mask_full)
    a[mask_full > 0] = np.asarray(mod.weight)
    bias = np.asarray(mod.bias)

    # 1) same bf16 quantization as the kernel, f32 accumulate -> tight check.
    a_bf = np.asarray(jnp.asarray(a).astype(jnp.bfloat16).astype(jnp.float32))
    x_bf = np.asarray(jnp.asarray(x_flat).astype(jnp.bfloat16).astype(jnp.float32))
    y_ref_bf = x_bf @ a_bf.T + bias
    assert np.allclose(np.asarray(y), y_ref_bf, atol=2e-3, rtol=2e-3)

    # 2) full-f32 module semantics -> loose check (kernel inputs are bf16).
    y_ref_f32 = x_flat @ a.T + bias
    assert np.allclose(np.asarray(y), y_ref_f32, atol=5e-2, rtol=5e-2)

    print("KERNEL_OK")
</pallas_src>

<mosaic_0001>
module attributes {stable_mosaic.version = 11 : i64} {
  func.func @_lcn_matmul_kernel(%arg0: i32, %arg1: i32, %arg2: i32, %arg3: memref<1xi32, #tpu.memory_space<smem>>, %arg4: memref<16x128xbf16, #tpu.memory_space<vmem>>, %arg5: memref<128x128xbf16, #tpu.memory_space<vmem>>, %arg6: memref<1x128xf32, #tpu.memory_space<vmem>>, %arg7: memref<16x128xf32, #tpu.memory_space<vmem>>) attributes {dimension_semantics = [#tpu.dimension_semantics<parallel>, #tpu.dimension_semantics<parallel>, #tpu.dimension_semantics<arbitrary>], iteration_bounds = array<i64: 1, 1, 1>, scalar_prefetch = 1 : i64, scratch_operands = 0 : i64, tpu.core_type = #tpu.core_type<tc>, window_params = [{transform_indices = @transform_0, window_bounds = array<i64: 16, 128>}, {transform_indices = @transform_1, window_bounds = array<i64: 128, 128>}, {transform_indices = @transform_2, window_bounds = array<i64: 1, 128>}, {transform_indices = @transform_3, window_bounds = array<i64: 16, 128>}]} {
    %c0_i32 = arith.constant 0 : i32
    %0 = arith.cmpi eq, %arg2, %c0_i32 : i32
    %1 = arith.extui %0 : i1 to i32
    %c0_i32_0 = arith.constant 0 : i32
    %2 = arith.cmpi ne, %1, %c0_i32_0 : i32
    scf.if %2 {
      %cst_10 = arith.constant 0.000000e+00 : f32
      %12 = vector.broadcast %cst_10 : f32 to vector<16x128xf32>
      %c0_11 = arith.constant 0 : index
      %c0_12 = arith.constant 0 : index
      %13 = vector.load %arg7[%c0_11, %c0_12] : memref<16x128xf32, #tpu.memory_space<vmem>>, vector<16x128xf32>
      tpu.vector_store %arg7[%c0_11, %c0_12], %12 {strides = array<i32>} : memref<16x128xf32, #tpu.memory_space<vmem>>, vector<16x128xf32>,
    } else {
    }
    %c0 = arith.constant 0 : index
    %c0_1 = arith.constant 0 : index
    %3 = vector.load %arg7[%c0, %c0_1] : memref<16x128xf32, #tpu.memory_space<vmem>>, vector<16x128xf32>
    %c0_2 = arith.constant 0 : index
    %c0_3 = arith.constant 0 : index
    %4 = vector.load %arg4[%c0_2, %c0_3] : memref<16x128xbf16, #tpu.memory_space<vmem>>, vector<16x128xbf16>
    %c0_4 = arith.constant 0 : index
    %c0_5 = arith.constant 0 : index
    %5 = vector.load %arg5[%c0_4, %c0_5] : memref<128x128xbf16, #tpu.memory_space<vmem>>, vector<128x128xbf16>
    %cst = arith.constant dense<0.000000e+00> : vector<16x128xf32>
    %6 = tpu.matmul %4, %5, %cst {dimension_numbers = #tpu.dot_dimension_numbers<[1], [0], [0], [1], [0, 0, 1, 1], [], []>} : vector<16x128xbf16>, vector<128x128xbf16>, vector<16x128xf32> -> vector<16x128xf32>
    %7 = arith.addf %3, %6 : vector<16x128xf32>
    %c0_6 = arith.constant 0 : index
    %c0_7 = arith.constant 0 : index
    %8 = vector.load %arg7[%c0_6, %c0_7] : memref<16x128xf32, #tpu.memory_space<vmem>>, vector<16x128xf32>
    tpu.vector_store %arg7[%c0_6, %c0_7], %7 {strides = array<i32>} : memref<16x128xf32, #tpu.memory_space<vmem>>, vector<16x128xf32>,
    %c0_i32_8 = arith.constant 0 : i32
    %9 = arith.cmpi eq, %arg2, %c0_i32_8 : i32
    %10 = arith.extui %9 : i1 to i32
    %c0_i32_9 = arith.constant 0 : i32
    %11 = arith.cmpi ne, %10, %c0_i32_9 : i32
    scf.if %11 {
      %c0_10 = arith.constant 0 : index
      %c0_11 = arith.constant 0 : index
      %12 = vector.load %arg7[%c0_10, %c0_11] : memref<16x128xf32, #tpu.memory_space<vmem>>, vector<16x128xf32>
      %c0_12 = arith.constant 0 : index
      %c0_13 = arith.constant 0 : index
      %13 = vector.load %arg6[%c0_12, %c0_13] : memref<1x128xf32, #tpu.memory_space<vmem>>, vector<1x128xf32>
      %14 = vector.broadcast %13 : vector<1x128xf32> to vector<16x128xf32>
      %15 = arith.addf %12, %14 : vector<16x128xf32>
      %c0_14 = arith.constant 0 : index
      %c0_15 = arith.constant 0 : index
      %16 = vector.load %arg7[%c0_14, %c0_15] : memref<16x128xf32, #tpu.memory_space<vmem>>, vector<16x128xf32>
      tpu.vector_store %arg7[%c0_14, %c0_15], %15 {strides = array<i32>} : memref<16x128xf32, #tpu.memory_space<vmem>>, vector<16x128xf32>,
    } else {
    }
    return
  }
  func.func @transform_0(%arg0: i32, %arg1: i32, %arg2: i32, %arg3: memref<1xi32, #tpu.memory_space<smem>>) -> (i32, i32) {
    %0 = arith.index_cast %arg1 : i32 to index
    %1 = memref.load %arg3[%0] : memref<1xi32, #tpu.memory_space<smem>>
    %2 = arith.addi %1, %arg2 : i32
    %c0_i32 = arith.constant 0 : i32
    return %arg0, %2 : i32, i32
  }
  func.func @transform_1(%arg0: i32, %arg1: i32, %arg2: i32, %arg3: memref<1xi32, #tpu.memory_space<smem>>) -> (i32, i32) {
    %0 = arith.index_cast %arg1 : i32 to index
    %1 = memref.load %arg3[%0] : memref<1xi32, #tpu.memory_space<smem>>
    %2 = arith.addi %1, %arg2 : i32
    %c0_i32 = arith.constant 0 : i32
    return %2, %arg1 : i32, i32
  }
  func.func @transform_2(%arg0: i32, %arg1: i32, %arg2: i32, %arg3: memref<1xi32, #tpu.memory_space<smem>>) -> (i32, i32) {
    %c0_i32 = arith.constant 0 : i32
    %c0_i32_0 = arith.constant 0 : i32
    return %c0_i32, %arg1 : i32, i32
  }
  func.func @transform_3(%arg0: i32, %arg1: i32, %arg2: i32, %arg3: memref<1xi32, #tpu.memory_space<smem>>) -> (i32, i32) {
    %c0_i32 = arith.constant 0 : i32
    return %arg0, %arg1 : i32, i32
  }
}

</mosaic_0001>

<bundles_post_ra>
// kernel: _forward_impl.1
= control target key start
LH: loop header
LB: loop body
LE: loop exit
PB: predicated region body
PF: predicated region fallthrough
CT: control target
= control target key end

     0   :  { %v276_v0 = vmov 0.0   ;;  %vm277_vm0 = vmmov 0   ;;  %s327_s0 = inlined_call_operand.<no memory space> [shape: s32[1], index: 0, kind: input, shape index: {}]   ;;  %s328_s1 = inlined_call_operand.vmem [shape: bf16[16,128], index: 1, kind: input, shape index: {}]   ;;  %s329_s2 = inlined_call_operand.vmem [shape: bf16[128,128], index: 2, kind: input, shape index: {}]   ;;  %s330_s3 = inlined_call_operand.vmem [shape: f32[1,128], index: 3, kind: input, shape index: {}]   ;;  %s331_s4 = inlined_call_operand.vmem [shape: f32[16,128], index: 4, kind: output, shape index: {}]  }
   0x1   :  { %245 = vmatprep.subr.bf16.mxu0 %v276_v0  ;;  %s224_s17 = sshll.u32 %s327_s0, 4  ;;  %261 = vmatprep.mubr.msk.bf16.mxu0 %vm277_vm0, %v276_v0  ;;  %p49_p0 = scmp.lt.s32.totalorder %s327_s0, 0  ;;  %v235_v11 = vld [vmem:[%s330_s3] ss:$0 sm:$0xff] }
   0x2   :  { %p58_p1 = scmp.lt.s32.totalorder %s224_s17, 15 }
   0x3   :  { %s333_s0 = smov (!%p49_p0, %s327_s0), 0 }
   0x4   :  { %s335_s17 = smov (!%p58_p1, %s224_s17), 15  ;;  %s223_s22 = sshll.u32 %s333_s0, 2 }
   0x5   :  { %s225_s23 = sshll.u32 %s335_s17, 2  ;;  %s52_s26 = scalar_lea.vmem %s328_s1, %s223_s22 }
   0x6   :  { %s61_s29 = scalar_lea.vmem %s329_s2, %s225_s23  ;;  %v275_v9 = vld [vmem:[%s52_s26] sm:$0xff]  }
   0x7   :  { %v267_v1 = vld [vmem:[%s61_s29] sm:$0xff]   ;;  %v268_v2 = vld [vmem:[%s61_s29 + $0x8] sm:$0xff]   ;;  %v269_v3 = vld [vmem:[%s61_s29 + $0x10] sm:$0xff]  }
   0x8   :  { %246 = vmatpush3.bf16.msra.mxu0 %v267_v1  ;;  %v270_v4 = vld [vmem:[%s61_s29 + $0x18] sm:$0xff]   ;;  %v271_v5 = vld [vmem:[%s61_s29 + $0x20] sm:$0xff]   ;;  %v272_v6 = vld [vmem:[%s61_s29 + $0x28] sm:$0xff]  }
   0x9   :  { %247 = vmatprep.subr.bf16.mxu0 %v276_v0  ;;  %v273_v7 = vld [vmem:[%s61_s29 + $0x30] sm:$0xff]   ;;  %v274_v8 = vld [vmem:[%s61_s29 + $0x38] sm:$0xff]  }
   0xc   :  { %248 = vmatpush3.bf16.msra.mxu0 %v268_v2 }
   0xd   :  { %249 = vmatprep.subr.bf16.mxu0 %v276_v0 }
  0x10   :  { %250 = vmatpush3.bf16.msra.mxu0 %v269_v3 }
  0x11   :  { %251 = vmatprep.subr.bf16.mxu0 %v276_v0 }
  0x14   :  { %252 = vmatpush3.bf16.msra.mxu0 %v270_v4 }
  0x15   :  { %253 = vmatprep.subr.bf16.mxu0 %v276_v0 }
  0x18   :  { %254 = vmatpush3.bf16.msra.mxu0 %v271_v5 }
  0x19   :  { %255 = vmatprep.subr.bf16.mxu0 %v276_v0 }
  0x1c   :  { %256 = vmatpush3.bf16.msra.mxu0 %v272_v6 }
  0x1d   :  { %257 = vmatprep.subr.bf16.mxu0 %v276_v0 }
  0x20   :  { %258 = vmatpush3.bf16.msra.mxu0 %v273_v7 }
  0x21   :  { %259 = vmatprep.subr.bf16.mxu0 %v276_v0 }
  0x24   :  { %260 = vmatpush3.bf16.msra.mxu0 %v274_v8 }
  0x27   :  { %262 = vmatmul.mubr.bf16.vlgmr.msra.gmra.mrb[0].mxu0 %v275_v9 }
  0xfa   :  { %v180_v10 = vpop.f32.mrb[0].mxu0 }
  0xfb   :  { %v263_v12 = vpop.f32.mrb[1].mxu0  ;;  %v203_v14 = vadd.f32 %v235_v11, %v180_v10 }
  0xfc   :  { %v183_v13 = vpop.f32.mrb[2].mxu0 }
  0xfd   :  { %v264_v15 = vpop.f32.mrb[3].mxu0  ;;  %205 = vst [vmem:[%s331_s4] sm:$0xff] %v203_v14  ;;  %v204_v16 = vadd.f32 %v235_v11, %v183_v13 }
  0xff   :  { %206 = vst [vmem:[%s331_s4 + $0x8] sm:$0xff] %v204_v16 }

</bundles_post_ra>
